<compile_context>
chip_gen: v6e
topology: v6e:2x2x1
jax: 0.10.0
libtpu: 0.0.40
codegen_flags: <defaults>
</compile_context>

<pallas_src>
import functools

import jax
import jax.numpy as jnp
from jax import lax
from jax.experimental import pallas as pl
from jax.experimental.pallas import tpu as pltpu


BN_EPS = 1e-5
LRELU_SLOPE = 0.2


def _round_up(x, m):
    return (x + m - 1) // m * m


def _cdiv(a, b):
    return -(-a // b)


def _vmem_budget_bytes():
    """~60% of this generation's physical VMEM (v5e/v6e 128 MiB, v7x 64 MiB)."""
    try:
        cap = int(pltpu.get_tpu_info().vmem_capacity_bytes)
    except Exception:
        cap = 64 << 20                      # conservative fallback (v7x-sized)
    return cap * 3 // 5


# --------------------------- pass 1: conv-as-matmul + BN partial stats -------


def _matmul_stats_kernel(m_total, tm, p_ref, w_ref, y_ref, stats_ref):
    """One M tile of P @ W plus per-tile BN partial statistics.

    p_ref:     [tm, K]       bf16 im2col patch tile
    w_ref:     [K, Co_pad]   bf16 flattened conv weight (resident single block)
    y_ref:     [tm, Co_pad]  bf16 conv output tile
    stats_ref: [8, Co_pad]   f32; row 0 = sum(y), row 1 = sum(y*y)
                             (rows 2..7 are never read by the wrapper)
    """
    y = jnp.dot(p_ref[...], w_ref[...], preferred_element_type=jnp.float32)
    y_ref[...] = y.astype(y_ref.dtype)

    if m_total % tm:
        # Ragged last M tile: rows >= M contain unspecified out-of-bounds data
        # (their y rows are dropped on store by Pallas) -> mask them out of
        # the statistics so mean/var divide by the true M only.
        row = pl.program_id(0) * tm + lax.broadcasted_iota(jnp.int32, (tm, 1), 0)
        y = jnp.where(row < m_total, y, 0.0)

    stats_ref[0:1, :] = jnp.sum(y, axis=0, keepdims=True)
    stats_ref[1:2, :] = jnp.sum(y * y, axis=0, keepdims=True)


# --------------------------- pass 2: BN + LeakyReLU + NHWC->NCHW -------------


def _bn_lrelu_nchw_kernel(co, y_ref, scale_ref, shift_ref, o_ref):
    """z = y*scale + shift ; LeakyReLU(0.2) ; write transposed (NCHW) block.

    y_ref:  [t_hw, Co_pad] bf16     scale/shift: [1, Co_pad] f32
    o_ref:  [co, t_hw]     f32  (one image's channel-major slab)
    """
    # NOTE: f32 output keeps exact parity with the PyTorch module dtype; the
    # separate XLA transpose pass of the old version is gone (fused here).
    z = y_ref[...].astype(jnp.float32) * scale_ref[...] + shift_ref[...]
    z = jnp.where(z >= 0.0, z, LRELU_SLOPE * z)
    o_ref[...] = jnp.transpose(z)[:co, :]


# --------------------------- wrapper ------------------------------------------


def _im2col_nhwc(x_nhwc, kh, kw, stride):
    """NHWC -> patch matrix [N*Ho*Wo, kh*kw*C] with C minor (lane-dense)."""
    n, h, w, c = x_nhwc.shape
    ho = (h - kh) // stride + 1
    wo = (w - kw) // stride + 1
    cols = []
    for i in range(kh):
        for j in range(kw):
            cols.append(
                x_nhwc[:, i:i + stride * ho:stride, j:j + stride * wo:stride, :])
    p = jnp.stack(cols, axis=3)                        # [N, Ho, Wo, kh*kw, C]
    return p.reshape(n * ho * wo, kh * kw * c), ho, wo


@functools.partial(jax.jit, static_argnames=("kernel_size", "stride"))
def conv_block_forward(x_nchw, weight_oihw, gamma, beta, *, kernel_size=4, stride=2):
    """Forward pass of ConvBlock.  x_nchw: [N, C, H, W] -> [N, Co, Ho, Wo] f32."""
    n, c, h, w = x_nchw.shape
    co = weight_oihw.shape[0]
    kh = kw = kernel_size

    # ---- lane-dense im2col (NHWC, K order = (kh, kw, C)) --------------------
    # TODO(synk): move patch extraction fully into the kernel (stride-2
    # space-to-depth re-layout + manual DMA) so the 4x patch matrix is never
    # materialized in HBM.
    c_p = _round_up(c, 8)              # kh*kw=16 -> K = 16*c_p is lane-dense
    x_nhwc = jnp.transpose(x_nchw, (0, 2, 3, 1)).astype(jnp.bfloat16)
    if c_p != c:
        x_nhwc = jnp.pad(x_nhwc, ((0, 0), (0, 0), (0, 0), (0, c_p - c)))
    patches, ho, wo = _im2col_nhwc(x_nhwc, kh, kw, stride)
    m, k_pad = patches.shape           # k_pad = kh*kw*c_p

    # co_pad multiple of 128 (full MXU N on v5e; pix2pix Co>=256 layers land
    # on multiples of 256 automatically for v6e/v7x).
    co_pad = _round_up(co, 128)
    w_mat = weight_oihw.astype(jnp.float32)
    if c_p != c:
        w_mat = jnp.pad(w_mat, ((0, 0), (0, c_p - c), (0, 0), (0, 0)))
    w_mat = w_mat.transpose(2, 3, 1, 0).reshape(kh * kw * c_p, co)  # (kh,kw,C)-major
    w_mat = jnp.pad(w_mat, ((0, 0), (0, co_pad - co))).astype(jnp.bfloat16)

    gamma_p = jnp.pad(gamma.astype(jnp.float32), (0, co_pad - co))
    beta_p = jnp.pad(beta.astype(jnp.float32), (0, co_pad - co))

    budget = _vmem_budget_bytes()

    # ---- pass 1 tile sizing: >=2 M tiles (both v7x TCs), multiple of 16 rows
    # (bf16 sublanes), minimal ragged-tile waste. -----------------------------
    if m <= 16:
        tm = 16
    else:
        num_tiles = max(_cdiv(m, 512), 2)
        tm = min(512, _round_up(_cdiv(m, num_tiles), 16))

    def _p1_bytes(tm_):
        return (2 * tm_ * k_pad * 2        # patch tile, double-buffered, bf16
                + 2 * k_pad * co_pad * 2   # resident weight (budget 2 bufs)
                + 2 * tm_ * co_pad * 2     # y output tile
                + 2 * 8 * co_pad * 4       # stats tile
                + 3 * tm_ * co_pad * 4)    # f32 intermediates headroom

    while _p1_bytes(tm) + (4 << 20) > budget and tm > 16:
        tm = max(16, _round_up(tm // 2, 16))
    grid_m = _cdiv(m, tm)
    vmem1_limit = int(min(budget, max(_p1_bytes(tm) + (8 << 20), 16 << 20)))

    # TODO(synk): mark the resident weight with pipeline_mode=pl.Buffered(1)
    # once single-buffered specs are verified on all target runtimes.
    y_flat, stats = pl.pallas_call(
        functools.partial(_matmul_stats_kernel, m, tm),
        out_shape=(jax.ShapeDtypeStruct((m, co_pad), jnp.bfloat16),
                   jax.ShapeDtypeStruct((grid_m * 8, co_pad), jnp.float32)),
        grid_spec=pltpu.PrefetchScalarGridSpec(
            num_scalar_prefetch=0,
            grid=(grid_m,),
            in_specs=[
                pl.BlockSpec((tm, k_pad), lambda i: (i, 0)),
                # Full-K resident weight: block index never changes -> one DMA.
                pl.BlockSpec((k_pad, co_pad), lambda i: (0, 0)),
            ],
            out_specs=[
                pl.BlockSpec((tm, co_pad), lambda i: (i, 0)),
                pl.BlockSpec((8, co_pad), lambda i: (i, 0)),
            ],
        ),
        compiler_params=pltpu.CompilerParams(
            dimension_semantics=("parallel",),
            vmem_limit_bytes=vmem1_limit),
    )(patches, w_mat)

    # ---- finalize BN stats (tiny [Co_pad] math, f32) ------------------------
    # TODO(synk): switch to Welford-style per-tile partials if M grows to
    # millions of rows (E[y^2]-E[y]^2 in f32 loses precision).
    stats = stats.reshape(grid_m, 8, co_pad)
    m_f = jnp.float32(m)
    mean = jnp.sum(stats[:, 0, :], axis=0) / m_f
    var = jnp.maximum(jnp.sum(stats[:, 1, :], axis=0) / m_f - mean * mean, 0.0)
    scale_vec = gamma_p * lax.rsqrt(var + BN_EPS)
    shift_vec = beta_p - mean * scale_vec
    scale = scale_vec.reshape(1, co_pad)
    shift = shift_vec.reshape(1, co_pad)

    # ---- pass 2: normalize + LeakyReLU fused with NHWC->NCHW ----------------
    howo = ho * wo
    y3 = y_flat.reshape(n, howo, co_pad)          # free reshape (leading split)

    t_hw = howo if howo <= 2048 else 2048         # 2048 is a multiple of 128

    def _p2_bytes(t):
        return (2 * t * co_pad * 2                # y tile
                + 2 * co * t * 4                  # output tile
                + 4 * co_pad * 4                  # scale / shift
                + 3 * t * co_pad * 4)             # f32 intermediates headroom

    while (_p2_bytes(t_hw) + (4 << 20) > budget
           and t_hw > 128 and t_hw % 128 == 0):
        t_hw //= 2
    grid_hw = _cdiv(howo, t_hw)
    vmem2_limit = int(min(budget, max(_p2_bytes(t_hw) + (8 << 20), 16 << 20)))

    out = pl.pallas_call(
        functools.partial(_bn_lrelu_nchw_kernel, co),
        out_shape=jax.ShapeDtypeStruct((n, co, howo), jnp.float32),
        grid_spec=pltpu.PrefetchScalarGridSpec(
            num_scalar_prefetch=0,
            grid=(n, grid_hw),
            in_specs=[
                pl.BlockSpec((None, t_hw, co_pad), lambda b, s: (b, s, 0)),
                pl.BlockSpec((1, co_pad), lambda b, s: (0, 0)),
                pl.BlockSpec((1, co_pad), lambda b, s: (0, 0)),
            ],
            out_specs=pl.BlockSpec((None, co, t_hw), lambda b, s: (b, 0, s)),
        ),
        compiler_params=pltpu.CompilerParams(
            dimension_semantics=("parallel", "parallel"),
            vmem_limit_bytes=vmem2_limit),
    )(y3, scale, shift)

    return out.reshape(n, co, ho, wo)             # free reshape (trailing split)


# --------------------------- reference & test --------------------------------


def conv_block_reference(x_nchw, weight_oihw, gamma, beta, *, stride=2):
    """Plain-JAX f32 reference mirroring the PyTorch module (training-mode BN)."""
    y = lax.conv_general_dilated(
        x_nchw.astype(jnp.float32), weight_oihw.astype(jnp.float32),
        window_strides=(stride, stride), padding="VALID",
        dimension_numbers=("NCHW", "OIHW", "NCHW"))
    mean = jnp.mean(y, axis=(0, 2, 3), keepdims=True)
    var = jnp.mean((y - mean) ** 2, axis=(0, 2, 3), keepdims=True)
    y_hat = (y - mean) / jnp.sqrt(var + BN_EPS)
    z = y_hat * gamma.reshape(1, -1, 1, 1) + beta.reshape(1, -1, 1, 1)
    return jnp.where(z >= 0, z, LRELU_SLOPE * z)


if __name__ == "__main__":
    key = jax.random.PRNGKey(0)
    k_x, k_w, k_g, k_b = jax.random.split(key, 4)

    N, C_IN, C_OUT, H, W = 2, 4, 8, 16, 16
    KS, STRIDE = 4, 2

    x = jax.random.normal(k_x, (N, C_IN, H, W), dtype=jnp.float32)
    # Conv2d weight: [out_channels, in_channels, kh, kw], bias=False.
    weight = jax.random.normal(k_w, (C_OUT, C_IN, KS, KS), dtype=jnp.float32) * 0.1
    # BatchNorm affine params (deterministic, non-trivial).
    gamma = 1.0 + 0.1 * jax.random.normal(k_g, (C_OUT,), dtype=jnp.float32)
    beta = 0.1 * jax.random.normal(k_b, (C_OUT,), dtype=jnp.float32)

    out = conv_block_forward(x, weight, gamma, beta, kernel_size=KS, stride=STRIDE)
    out = jax.block_until_ready(out)

    ref = conv_block_reference(x, weight, gamma, beta, stride=STRIDE)
    assert out.shape == ref.shape, (out.shape, ref.shape)
    # bf16 MXU inputs with f32 accumulation -> slightly looser tolerance vs f32 ref.
    max_err = float(jnp.max(jnp.abs(out - ref)))
    assert jnp.allclose(out, ref, atol=5e-2, rtol=5e-2), max_err

    print("KERNEL_OK")
</pallas_src>

<mosaic_0001>
module attributes {stable_mosaic.version = 11 : i64} {
  func.func @_matmul_stats_kernel(%arg0: i32, %arg1: memref<64x128xbf16, #tpu.memory_space<vmem>>, %arg2: memref<128x128xbf16, #tpu.memory_space<vmem>>, %arg3: memref<64x128xbf16, #tpu.memory_space<vmem>>, %arg4: memref<8x128xf32, #tpu.memory_space<vmem>>) attributes {dimension_semantics = [#tpu.dimension_semantics<parallel>], iteration_bounds = array<i64: 2>, scalar_prefetch = 0 : i64, scratch_operands = 0 : i64, tpu.core_type = #tpu.core_type<tc>, window_params = [{transform_indices = @transform_0, window_bounds = array<i64: 64, 128>}, {pipeline_mode = #tpu.pipeline_mode<synchronous>, transform_indices = @transform_1, window_bounds = array<i64: 128, 128>}, {transform_indices = @transform_2, window_bounds = array<i64: 64, 128>}, {transform_indices = @transform_3, window_bounds = array<i64: 8, 128>}]} {
    %c0 = arith.constant 0 : index
    %c0_0 = arith.constant 0 : index
    %0 = vector.load %arg1[%c0, %c0_0] : memref<64x128xbf16, #tpu.memory_space<vmem>>, vector<64x128xbf16>
    %c0_1 = arith.constant 0 : index
    %c0_2 = arith.constant 0 : index
    %1 = vector.load %arg2[%c0_1, %c0_2] : memref<128x128xbf16, #tpu.memory_space<vmem>>, vector<128x128xbf16>
    %cst = arith.constant dense<0.000000e+00> : vector<64x128xf32>
    %2 = tpu.matmul %0, %1, %cst {dimension_numbers = #tpu.dot_dimension_numbers<[1], [0], [0], [1], [0, 0, 1, 1], [], []>} : vector<64x128xbf16>, vector<128x128xbf16>, vector<64x128xf32> -> vector<64x128xf32>
    %3 = arith.truncf %2 : vector<64x128xf32> to vector<64x128xbf16>
    %c0_3 = arith.constant 0 : index
    %c0_4 = arith.constant 0 : index
    %4 = vector.load %arg3[%c0_3, %c0_4] : memref<64x128xbf16, #tpu.memory_space<vmem>>, vector<64x128xbf16>
    tpu.vector_store %arg3[%c0_3, %c0_4], %3 {strides = array<i32>} : memref<64x128xbf16, #tpu.memory_space<vmem>>, vector<64x128xbf16>,
    %c64_i32 = arith.constant 64 : i32
    %5 = arith.muli %arg0, %c64_i32 : i32
    %6 = tpu.iota {dimensions = array<i32: 0>} : vector<64x1xi32>
    %7 = vector.broadcast %5 : i32 to vector<64x1xi32>
    %8 = arith.addi %7, %6 : vector<64x1xi32>
    %c98_i32 = arith.constant 98 : i32
    %9 = vector.broadcast %c98_i32 : i32 to vector<64x1xi32>
    %10 = arith.cmpi slt, %8, %9 : vector<64x1xi32>
    %cst_5 = arith.constant 0.000000e+00 : f32
    %11 = vector.shape_cast %10 : vector<64x1xi1> to vector<64x1xi1>
    %12 = vector.broadcast %11 : vector<64x1xi1> to vector<64x128xi1>
    %13 = vector.broadcast %cst_5 : f32 to vector<64x128xf32>
    %14 = arith.select %12, %2, %13 : vector<64x128xi1>, vector<64x128xf32>
    %cst_6 = arith.constant dense<0.000000e+00> : vector<128xf32>
    %15 = vector.multi_reduction <add>, %14, %cst_6 [0] : vector<64x128xf32> to vector<128xf32>
    %16 = vector.shape_cast %15 : vector<128xf32> to vector<1x128xf32>
    %c0_7 = arith.constant 0 : index
    %c0_8 = arith.constant 0 : index
    %17 = vector.load %arg4[%c0_7, %c0_8] : memref<8x128xf32, #tpu.memory_space<vmem>>, vector<1x128xf32>
    tpu.vector_store %arg4[%c0_7, %c0_8], %16 {strides = array<i32>} : memref<8x128xf32, #tpu.memory_space<vmem>>, vector<1x128xf32>,
    %18 = arith.mulf %14, %14 : vector<64x128xf32>
    %cst_9 = arith.constant dense<0.000000e+00> : vector<128xf32>
    %19 = vector.multi_reduction <add>, %18, %cst_9 [0] : vector<64x128xf32> to vector<128xf32>
    %20 = vector.shape_cast %19 : vector<128xf32> to vector<1x128xf32>
    %c1 = arith.constant 1 : index
    %c0_10 = arith.constant 0 : index
    %21 = vector.load %arg4[%c1, %c0_10] : memref<8x128xf32, #tpu.memory_space<vmem>>, vector<1x128xf32>
    tpu.vector_store %arg4[%c1, %c0_10], %20 {strides = array<i32>} : memref<8x128xf32, #tpu.memory_space<vmem>>, vector<1x128xf32>,
    return
  }
  func.func @transform_0(%arg0: i32) -> (i32, i32) {
    %c0_i32 = arith.constant 0 : i32
    %c0_i32_0 = arith.constant 0 : i32
    return %arg0, %c0_i32 : i32, i32
  }
  func.func @transform_1(%arg0: i32) -> (i32, i32) {
    %c0_i32 = arith.constant 0 : i32
    %c0_i32_0 = arith.constant 0 : i32
    %c0_i32_1 = arith.constant 0 : i32
    return %c0_i32, %c0_i32_0 : i32, i32
  }
  func.func @transform_2(%arg0: i32) -> (i32, i32) {
    %c0_i32 = arith.constant 0 : i32
    %c0_i32_0 = arith.constant 0 : i32
    return %arg0, %c0_i32 : i32, i32
  }
  func.func @transform_3(%arg0: i32) -> (i32, i32) {
    %c0_i32 = arith.constant 0 : i32
    %c0_i32_0 = arith.constant 0 : i32
    return %arg0, %c0_i32 : i32, i32
  }
}

module attributes {stable_mosaic.version = 11 : i64} {
  func.func @_bn_lrelu_nchw_kernel(%arg0: i32, %arg1: i32, %arg2: memref<1x49x128xbf16, #tpu.memory_space<vmem>>, %arg3: memref<1x128xf32, #tpu.memory_space<vmem>>, %arg4: memref<1x128xf32, #tpu.memory_space<vmem>>, %arg5: memref<1x8x49xf32, #tpu.memory_space<vmem>>) attributes {dimension_semantics = [#tpu.dimension_semantics<parallel>, #tpu.dimension_semantics<parallel>], iteration_bounds = array<i64: 2, 1>, scalar_prefetch = 0 : i64, scratch_operands = 0 : i64, tpu.core_type = #tpu.core_type<tc>, window_params = [{transform_indices = @transform_0, window_bounds = array<i64: 1, 49, 128>}, {pipeline_mode = #tpu.pipeline_mode<synchronous>, transform_indices = @transform_1, window_bounds = array<i64: 1, 128>}, {pipeline_mode = #tpu.pipeline_mode<synchronous>, transform_indices = @transform_2, window_bounds = array<i64: 1, 128>}, {transform_indices = @transform_3, window_bounds = array<i64: 1, 8, 49>}]} {
    %c0 = arith.constant 0 : index
    %c0_0 = arith.constant 0 : index
    %c0_1 = arith.constant 0 : index
    %0 = vector.load %arg2[%c0, %c0_0, %c0_1] : memref<1x49x128xbf16, #tpu.memory_space<vmem>>, vector<1x49x128xbf16>
    %1 = vector.shape_cast %0 : vector<1x49x128xbf16> to vector<49x128xbf16>
    %2 = arith.extf %1 : vector<49x128xbf16> to vector<49x128xf32>
    %c0_2 = arith.constant 0 : index
    %c0_3 = arith.constant 0 : index
    %3 = vector.load %arg3[%c0_2, %c0_3] : memref<1x128xf32, #tpu.memory_space<vmem>>, vector<1x128xf32>
    %4 = vector.broadcast %3 : vector<1x128xf32> to vector<49x128xf32>
    %5 = arith.mulf %2, %4 : vector<49x128xf32>
    %c0_4 = arith.constant 0 : index
    %c0_5 = arith.constant 0 : index
    %6 = vector.load %arg4[%c0_4, %c0_5] : memref<1x128xf32, #tpu.memory_space<vmem>>, vector<1x128xf32>
    %7 = vector.broadcast %6 : vector<1x128xf32> to vector<49x128xf32>
    %8 = arith.addf %5, %7 : vector<49x128xf32>
    %cst = arith.constant 0.000000e+00 : f32
    %9 = vector.broadcast %cst : f32 to vector<49x128xf32>
    %10 = arith.cmpf oge, %8, %9 : vector<49x128xf32>
    %cst_6 = arith.constant 2.000000e-01 : f32
    %11 = vector.broadcast %cst_6 : f32 to vector<49x128xf32>
    %12 = arith.mulf %11, %8 : vector<49x128xf32>
    %13 = arith.select %10, %8, %12 : vector<49x128xi1>, vector<49x128xf32>
    %14 = tpu.transpose %13, [1, 0] : vector<49x128xf32> -> vector<128x49xf32>
    %15 = vector.extract_strided_slice %14 {offsets = [0, 0], sizes = [8, 49], strides = [1, 1]} : vector<128x49xf32> to vector<8x49xf32>
    %c0_7 = arith.constant 0 : index
    %c0_8 = arith.constant 0 : index
    %c0_9 = arith.constant 0 : index
    %16 = vector.load %arg5[%c0_7, %c0_8, %c0_9] : memref<1x8x49xf32, #tpu.memory_space<vmem>>, vector<1x8x49xf32>
    %17 = vector.shape_cast %16 : vector<1x8x49xf32> to vector<8x49xf32>
    %18 = vector.shape_cast %15 : vector<8x49xf32> to vector<1x8x49xf32>
    tpu.vector_store %arg5[%c0_7, %c0_8, %c0_9], %18 {strides = array<i32>} : memref<1x8x49xf32, #tpu.memory_space<vmem>>, vector<1x8x49xf32>,
    return
  }
  func.func @transform_0(%arg0: i32, %arg1: i32) -> (i32, i32, i32) {
    %c0_i32 = arith.constant 0 : i32
    %c0_i32_0 = arith.constant 0 : i32
    return %arg0, %arg1, %c0_i32 : i32, i32, i32
  }
  func.func @transform_1(%arg0: i32, %arg1: i32) -> (i32, i32) {
    %c0_i32 = arith.constant 0 : i32
    %c0_i32_0 = arith.constant 0 : i32
    %c0_i32_1 = arith.constant 0 : i32
    return %c0_i32, %c0_i32_0 : i32, i32
  }
  func.func @transform_2(%arg0: i32, %arg1: i32) -> (i32, i32) {
    %c0_i32 = arith.constant 0 : i32
    %c0_i32_0 = arith.constant 0 : i32
    %c0_i32_1 = arith.constant 0 : i32
    return %c0_i32, %c0_i32_0 : i32, i32
  }
  func.func @transform_3(%arg0: i32, %arg1: i32) -> (i32, i32, i32) {
    %c0_i32 = arith.constant 0 : i32
    %c0_i32_0 = arith.constant 0 : i32
    return %arg0, %c0_i32, %arg1 : i32, i32, i32
  }
}

</mosaic_0001>

<bundles_post_ra>
// kernel: conv_block_forward.3
= control target key start
LH: loop header
LB: loop body
LE: loop exit
PB: predicated region body
PF: predicated region fallthrough
CT: control target
= control target key end

     0   :  { %s474_s12 = smov 0   ;;  %s476_s13 = smov 0   ;;  %s517_s0 = inlined_call_operand.vmem [shape: bf16[2,49,128], index: 0, kind: input, shape index: {}]   ;;  %s518_s1 = inlined_call_operand.vmem [shape: f32[1,128], index: 1, kind: input, shape index: {}]   ;;  %s519_s2 = inlined_call_operand.vmem [shape: f32[1,128], index: 2, kind: input, shape index: {}]   ;;  %s520_s3 = inlined_call_operand.vmem [shape: f32[2,8,49], index: 3, kind: output, shape index: {}]  }
   0x1   :  { %s478_s14 = smov 0  }
   0x2 LB: > { %s25_s15 = sadd.s32 1, %s448_s13  ;;  %p383_p0 = scmp.ge.s32.totalorder %s452_s14, 1  ;;  %s452_s14 = sphi %s478_s14, %s13_s14   ;;  %s448_s13 = sphi %s476_s13, %s522_s13   ;;  %s444_s12 = sphi %s474_s12, %s521_s12  }
   0x3   : > { %p27_p1 = scmp.ge.s32.totalorder %s25_s15, 2  ;;  %p158_p2 = scmp.lt.s32.totalorder %s452_s14, 3 }
   0x5   : > { %s524_s15 = smov (%p27_p1, %s25_s15), 0  ;;  %p159_p3 = pnand %p383_p0, %p158_p2 }
   0x6   : > { %p189_p4 = scmp.lt.s32.totalorder (!%p159_p3), %s444_s12, 1 }
   0x7   : > { %162 = sbr.rel (%p159_p3) target bundleno = 152 (0x98), region = 32 }
   0xc   : > { %s526_s12 = smov (!%p189_p4, %s444_s12), 1  ;;  %v386_v1 = vld [vmem:[%s518_s1] ss:$0 sm:$0xff]  ;;  %vm300_vm7 = vcmask 400384  }
   0xd   : > { %s404_s16 = smul.u32 28, %s526_s12  ;;  %v387_v6 = vld [vmem:[%s519_s2] ss:$0 sm:$0xff]  ;;  %s385_s24 = sshll.u32 %s526_s12, 3 }
   0xe   : > { %s204_s27 = scalar_lea.vmem %s520_s3, %s385_s24 }
   0xf   : > { %s196_s19 = scalar_lea.vmem %s517_s0, %s404_s16 }
  0x10   : > { %v391_v0 = vld [vmem:[%s196_s19] sm:$0xff]   ;;  %v402_v2 = vld [vmem:[%s196_s19 + $0x8] sm:$0xff]   ;;  %v403_v11 = vld [vmem:[%s196_s19 + $0x10] sm:$0xff]  }
  0x11   : > { %v392_v3 = vunpack.c.l.bf16 %v391_v0  ;;  %v393_v4 = vunpack.c.h.bf16 %v391_v0  ;;  %v396_v5 = vunpack.c.l.bf16 %v402_v2  ;;  %v397_v7 = vunpack.c.h.bf16 %v402_v2  ;;  %v211_v25 = vld [vmem:[%s196_s19 + $0x18] sm:$0x1] }
  0x12   : > { %v400_v15 = vunpack.c.l.bf16 %v403_v11  ;;  %v401_v20 = vunpack.c.h.bf16 %v403_v11  ;;  %v218_v26 = vunpack.c.l.bf16 %v211_v25 }
  0x13   : > { %v226_v8 = vmul.f32 %v392_v3, %v386_v1  ;;  %v227_v9 = vmul.f32 %v393_v4, %v386_v1  ;;  %v228_v10 = vmul.f32 %v396_v5, %v386_v1  ;;  %v229_v14 = vmul.f32 %v397_v7, %v386_v1 }
  0x14   : > { %v230_v24 = vmul.f32 %v400_v15, %v386_v1  ;;  %v231_v30 = vmul.f32 %v401_v20, %v386_v1  ;;  %v232_v34 = vmul.f32 %v386_v1, %v218_v26 }
  0x15   : > { %v240_v12 = vadd.f32 %v387_v6, %v226_v8  ;;  %v241_v13 = vadd.f32 %v387_v6, %v227_v9  ;;  %v242_v18 = vadd.f32 %v387_v6, %v228_v10  ;;  %v243_v23 = vadd.f32 %v387_v6, %v229_v14 }
  0x16   : > { %v244_v29 = vadd.f32 %v387_v6, %v230_v24  ;;  %v245_v33 = vadd.f32 %v387_v6, %v231_v30  ;;  %v246_v37 = vadd.f32 %v387_v6, %v232_v34 }
  0x17   : > { %vm247_vm0 = vcmp.ge.f32.partialorder %v240_v12, 0.0  ;;  %v254_v16 = vmul.f32 0.2, %v240_v12  ;;  %v255_v17 = vmul.f32 0.2, %v241_v13  ;;  %vm248_vm1 = vcmp.ge.f32.partialorder %v241_v13, 0.0 }
  0x18   : > { %v256_v22 = vmul.f32 0.2, %v242_v18  ;;  %vm249_vm2 = vcmp.ge.f32.partialorder %v242_v18, 0.0  ;;  %v257_v28 = vmul.f32 0.2, %v243_v23  ;;  %vm250_vm3 = vcmp.ge.f32.partialorder %v243_v23, 0.0 }
  0x19   : > { %v261_v19 = vsel %vm247_vm0, %v240_v12, %v254_v16  ;;  %v262_v21 = vsel %vm248_vm1, %v241_v13, %v255_v17  ;;  %v258_v32 = vmul.f32 0.2, %v244_v29  ;;  %vm251_vm4 = vcmp.ge.f32.partialorder %v244_v29, 0.0 }
  0x1a   : > { %268 = vxpose.xlu0.b32.start [1/7] (short) (narrow) %v261_v19, 8  ;;  %v263_v27 = vsel %vm249_vm2, %v242_v18, %v256_v22  ;;  %v264_v31 = vsel %vm250_vm3, %v243_v23, %v257_v28  ;;  %v259_v36 = vmul.f32 0.2, %v245_v33  ;;  %vm252_vm5 = vcmp.ge.f32.partialorder %v245_v33, 0.0 }
  0x1b   : > { %v265_v35 = vsel %vm251_vm4, %v244_v29, %v258_v32  ;;  %v260_v39 = vmul.f32 0.2, %v246_v37  ;;  %vm253_vm6 = vcmp.ge.f32.partialorder %v246_v37, 0.0 }
  0x1c   : > { %v266_v38 = vsel %vm252_vm5, %v245_v33, %v259_v36 }
  0x1d   : > { %v267_v40 = vsel %vm253_vm6, %v246_v37, %v260_v39 }
  0x1e   : > { %269 = vxpose.xlu0.b32.cont [2/7] (short) (narrow) %v262_v21, 8 }
  0x22   : > { %270 = vxpose.xlu0.b32.cont [3/7] (short) (narrow) %v263_v27, 8 }
  0x26   : > { %271 = vxpose.xlu0.b32.cont [4/7] (short) (narrow) %v264_v31, 8 }
  0x2a   : > { %272 = vxpose.xlu0.b32.cont [5/7] (short) (narrow) %v265_v35, 8 }
  0x2e   : > { %273 = vxpose.xlu0.b32.cont [6/7] (short) (narrow) %v266_v38, 8 }
  0x32   : > { %274 = vxpose.xlu0.b32.end [7/7] (short) (narrow) %v267_v40, 8 }
  0x96   : > { %v284_v41 = vpop.trf.xlu0 }
  0x97   : > { %301 = vst.msk [vmem:[%s204_s27] sm:$0xff] %vm300_vm7, %v284_v41 }
  0x98 PF: > { %s13_s14 = sadd.s32 1, %s452_s14   ;;  %s521_s12 = smov %s448_s13 }
  0x99   : > { %p10_p5 = scmp.ge.s32.totalorder %s13_s14, 4   ;;  %s522_s13 = smov %s524_s15 }
  0x9b   :  { %12 = sbr.rel (!%p10_p5) target bundleno = 2 (0x2), region = 62 }

// kernel: conv_block_forward.2
= control target key start
LH: loop header
LB: loop body
LE: loop exit
PB: predicated region body
PF: predicated region fallthrough
CT: control target
= control target key end

     0   :  { %s1107_s12 = smov 0   ;;  %s1109_s13 = smov 0   ;;  %s1248_s0 = inlined_call_operand.vmem [shape: bf16[98,128], index: 0, kind: input, shape index: {}]   ;;  %s1249_s1 = inlined_call_operand.vmem [shape: bf16[128,128], index: 1, kind: input, shape index: {}]   ;;  %s1250_s2 = inlined_call_operand.vmem [shape: bf16[98,128], index: 2, kind: output, shape index: {0}]   ;;  %s1251_s3 = inlined_call_operand.vmem [shape: f32[16,128], index: 3, kind: output, shape index: {1}]  }
   0x1   :  { %s1111_s14 = smov 0  }
   0x2 LB: > { %s1120_s15 = sadd.s32 4294967295, %s1053_s14   ;;  %s1122_s16 = sadd.s32 1, %s1053_s14   ;;  %s1053_s14 = sphi %s1111_s14, %s1258_s14   ;;  %s1049_s13 = sphi %s1109_s13, %s1257_s13   ;;  %s1045_s12 = sphi %s1107_s12, %s1256_s12  }
   0x3   : > { %s65_s17 = ssub.s32 %s1053_s14, %s1122_s16  ;;  %s68_s18 = sadd.s32 1, %s1049_s13 }
   0x4   : > { %p66_p0 = scmp.eq.s32.totalorder %s65_s17, 0  ;;  %p78_p1 = scmp.ne.s32.totalorder %s1049_s13, %s1045_s12 }
   0x5   : > { %p79_p2 = scmp.eq.s32.totalorder %s1120_s15, 1  ;;  %p770_p3 = scmp.ge.s32.totalorder %s1053_s14, 1 }
   0x6   : > { %s1130_s19 = scalar_select %p66_p0, %s1049_s13, %s68_s18  }
   0x7   : > { %p1132_p4 = por %p79_p2, %p78_p1  ;;  %p149_p5 = scmp.lt.s32.totalorder %s1053_s14, 3 }
   0x9   : > { %p150_p6 = pnand %p770_p3, %p149_p5 }
   0xa   : > { %s1140_s23 = sshll.u32 (!%p150_p6), %s1120_s15, 3  ;;  %s795_s22 = sshll.u32 (!%p150_p6), %s1120_s15, 6 }
   0xb   : > { %153 = sbr.rel (%p150_p6) target bundleno = 322 (0x142), region = 28  ;;  %p185_p7 = scmp.lt.s32.totalorder (!%p150_p6), %s1140_s23, 12 }
   0xc   : > { %s171_s24 = sand.u32 (!%p150_p6), 1, %s1045_s12   ;;  %p199_p8 = scmp.lt.s32.totalorder (!%p150_p6), %s1120_s15, 1 }
   0xd   : > { %s771_s25 = sshll.u32 (!%p150_p6), %s171_s24, 5 }
   0xe   : > { %s1176_s12 = scalar_lea.vmem (!%p150_p6), [#allocation2], %s771_s25  }
  0x10   : > { %v987_v0 = vld [vmem:[%s1249_s1 + $0x38] sm:$0xff]   ;;  %v988_v1 = vld [vmem:[%s1249_s1 + $0x30] sm:$0xff]   ;;  %s186_s26 = scalar_select %p185_p7, %s1140_s23, 12  ;;  %v989_v2 = vld [vmem:[%s1249_s1 + $0x28] sm:$0xff]   ;;  %v406_v12 = vlaneseq  ;;  %v415_v16 = vstv %s795_s22 }
  0x11   : > { %859 = vmatprep.subr.bf16.mxu0 %v987_v0  ;;  %883 = vmatprep.subr.bf16.mxu1 %v987_v0  ;;  %v990_v3 = vld [vmem:[%s1249_s1 + $0x20] sm:$0xff]   ;;  %v991_v6 = vld [vmem:[%s1249_s1 + $0x18] sm:$0xff]   ;;  %v992_v7 = vld [vmem:[%s1249_s1 + $0x10] sm:$0xff]   ;;  %s504_s4 = ssub.s32 (%p1132_p4), 13, %s1140_s23 }
  0x12   : > { %860 = vmatpush3.bf16.msra.mxu0 %v987_v0  ;;  %891 = vmatpush3.bf16.msra.mxu1 %v987_v0  ;;  %s773_s29 = sshll.u32 %s186_s26, 2  ;;  %v993_v8 = vld [vmem:[%s1249_s1 + $0x8] sm:$0xff]   ;;  %v994_v9 = vld [vmem:[%s1249_s1] sm:$0xff]   ;;  %v407_v13 = vshrl.u32 %v406_v12, 7  ;;  %p505_p9 = scmp.lt.s32.totalorder (%p1132_p4), %s504_s4, 8 }
  0x13   : > { %861 = vmatprep.subr.bf16.mxu0 %v988_v1  ;;  %884 = vmatprep.subr.bf16.mxu1 %v988_v1  ;;  %s1153_s5 = scalar_lea.vmem %s1248_s0, %s773_s29 }
  0x14   : > { %v995_v4 = vld [vmem:[%s1153_s5] sm:$0xff]   ;;  %v997_v5 = vld [vmem:[%s1153_s5 + $0x10] sm:$0xff]   ;;  %v996_v10 = vld [vmem:[%s1153_s5 + $0x8] sm:$0xff]   ;;  %v409_v14 = vadd.s32 16, %v407_v13  ;;  %v408_v15 = vadd.s32 8, %v407_v13  ;;  %v416_v17 = vadd.s32 %v415_v16, %v407_v13  ;;  %v410_v18 = vadd.s32 24, %v407_v13 }
  0x15   : > { %875 = vmatprep.mubr.bf16.mxu0 %v995_v4  ;;  %879 = vmatprep.mubr.bf16.mxu1 %v997_v5  ;;  %v998_v11 = vld [vmem:[%s1153_s5 + $0x18] sm:$0xff]   ;;  %v411_v22 = vadd.s32 32, %v407_v13  ;;  %v413_v25 = vadd.s32 48, %v407_v13  ;;  %v412_v28 = vadd.s32 40, %v407_v13  ;;  %v414_v35 = vadd.s32 56, %v407_v13  ;;  %s200_s26 = scalar_select %p199_p8, %s1120_s15, 1 }
  0x16   : > { %862 = vmatpush3.bf16.msra.mxu0 %v988_v1  ;;  %892 = vmatpush3.bf16.msra.mxu1 %v988_v1  ;;  %v418_v20 = vadd.s32 %v415_v16, %v409_v14  ;;  %v417_v23 = vadd.s32 %v415_v16, %v408_v15  ;;  %vm424_vm0 = vcmp.lt.s32.totalorder %v416_v17, 98  ;;  %v419_v26 = vadd.s32 %v415_v16, %v410_v18  ;;  %s821_s5 = sshll.u32 (%p1132_p4), %s1120_s15, 5 }
  0x17   : > { %863 = vmatprep.subr.bf16.mxu0 %v989_v2  ;;  %885 = vmatprep.subr.bf16.mxu1 %v989_v2  ;;  %v420_v30 = vadd.s32 %v415_v16, %v411_v22  ;;  %v422_v36 = vadd.s32 %v415_v16, %v413_v25  ;;  %v421_v39 = vadd.s32 %v415_v16, %v412_v28  ;;  %s774_s27 = sshll.u32 %s200_s26, 3  ;;  %s1194_s8 = scalar_lea.vmem (%p1132_p4), %s1250_s2, %s821_s5  }
  0x18   : > { %vm426_vm1 = vcmp.lt.s32.totalorder %v418_v20, 98  ;;  %vm425_vm2 = vcmp.lt.s32.totalorder %v417_v23, 98  ;;  %vm427_vm3 = vcmp.lt.s32.totalorder %v419_v26, 98  ;;  %v423_v48 = vadd.s32 %v415_v16, %v414_v35  ;;  %s202_s30 = scalar_lea.vmem %s1251_s3, %s774_s27 }
  0x19   : > { %vm428_vm4 = vcmp.lt.s32.totalorder %v420_v30, 98  ;;  %vm429_vm5 = vcmp.lt.s32.totalorder %v421_v39, 98  ;;  %vm430_vm6 = vcmp.lt.s32.totalorder %v422_v36, 98 }
  0x1a   : > { %864 = vmatpush3.bf16.msra.mxu0 %v989_v2  ;;  %893 = vmatpush3.bf16.msra.mxu1 %v989_v2  ;;  %vm431_vm7 = vcmp.lt.s32.totalorder %v423_v48, 98 }
  0x1b   : > { %865 = vmatprep.subr.bf16.mxu0 %v990_v3  ;;  %886 = vmatprep.subr.bf16.mxu1 %v990_v3 }
  0x1e   : > { %866 = vmatpush3.bf16.msra.mxu0 %v990_v3  ;;  %894 = vmatpush3.bf16.msra.mxu1 %v990_v3 }
  0x1f   : > { %867 = vmatprep.subr.bf16.mxu0 %v991_v6  ;;  %887 = vmatprep.subr.bf16.mxu1 %v991_v6 }
  0x22   : > { %868 = vmatpush3.bf16.msra.mxu0 %v991_v6  ;;  %895 = vmatpush3.bf16.msra.mxu1 %v991_v6 }
  0x23   : > { %869 = vmatprep.subr.bf16.mxu0 %v992_v7  ;;  %888 = vmatprep.subr.bf16.mxu1 %v992_v7 }
  0x26   : > { %870 = vmatpush3.bf16.msra.mxu0 %v992_v7  ;;  %896 = vmatpush3.bf16.msra.mxu1 %v992_v7 }
  0x27   : > { %871 = vmatprep.subr.bf16.mxu0 %v993_v8  ;;  %889 = vmatprep.subr.bf16.mxu1 %v993_v8 }
  0x2a   : > { %872 = vmatpush3.bf16.msra.mxu0 %v993_v8  ;;  %897 = vmatpush3.bf16.msra.mxu1 %v993_v8 }
  0x2b   : > { %873 = vmatprep.subr.bf16.mxu0 %v994_v9  ;;  %890 = vmatprep.subr.bf16.mxu1 %v994_v9 }
  0x2e   : > { %874 = vmatpush3.bf16.msra.mxu0 %v994_v9  ;;  %898 = vmatpush3.bf16.msra.mxu1 %v994_v9 }
  0x31   : > { %876 = vmatmul.mubr.bf16.vlgmr.msra.gmra.mxu0 %v996_v10  ;;  %880 = vmatmul.mubr.bf16.vlgmr.msra.gmra.mxu1 %v998_v11 }
  0xf1   : > { %v877_v19 = vpop.f32.mrf.mxu0  ;;  %v881_v21 = vpop.f32.mrf.mxu1 }
  0xf2   : > { %v450_v40 = vsel %vm426_vm1, %v877_v19, 0.0  ;;  %v454_v60 = vsel %vm430_vm6, %v881_v21, 0.0 }
  0xf3   : > { %v334_v24 = vpop.f32.mrf.mxu0  ;;  %v350_v27 = vpop.f32.mrf.mxu1  ;;  %v472_v49 = vmul.f32 %v450_v40, %v450_v40  ;;  %v476_v1 = vmul.f32 %v454_v60, %v454_v60 }
  0xf4   : > { %v448_v32 = vsel %vm424_vm0, %v334_v24, 0.0  ;;  %v452_v52 = vsel %vm428_vm4, %v350_v27, 0.0 }
  0xf5   : > { %v878_v29 = vpop.f32.mrf.mxu0  ;;  %v882_v31 = vpop.f32.mrf.mxu1  ;;  %v470_v44 = vmul.f32 %v448_v32, %v448_v32  ;;  %v474_v57 = vmul.f32 %v452_v52, %v452_v52 }
  0xf6   : > { %v832_v33 = vpack.c.bf16 %v878_v29, %v877_v19  ;;  %v842_v34 = vpack.c.bf16 %v882_v31, %v881_v21  ;;  %v451_v47 = vsel %vm427_vm3, %v878_v29, 0.0  ;;  %v455_v0 = vsel %vm431_vm7, %v882_v31, 0.0 }
  0xf7   : > { %v337_v37 = vpop.f32.mrf.mxu0  ;;  %v353_v38 = vpop.f32.mrf.mxu1  ;;  %v473_v53 = vmul.f32 %v451_v47, %v451_v47  ;;  %v477_v4 = vmul.f32 %v455_v0, %v455_v0 }
  0xf8   : > { %844 = vst [vmem:[%s1176_s12 + $0x8] sm:$0xff] %v832_v33   ;;  %v827_v41 = vpack.c.bf16 %v337_v37, %v334_v24  ;;  %v449_v42 = vsel %vm425_vm2, %v337_v37, 0.0  ;;  %846 = vst [vmem:[%s1176_s12 + $0x18] sm:$0xff] %v842_v34   ;;  %v837_v43 = vpack.c.bf16 %v353_v38, %v350_v27  ;;  %v453_v56 = vsel %vm429_vm5, %v353_v38, 0.0 }
  0xf9   : > { %v456_v45 = vadd.f32 %v449_v42, %v448_v32  ;;  %v471_v46 = vmul.f32 %v449_v42, %v449_v42  ;;  %v475_v62 = vmul.f32 %v453_v56, %v453_v56 }
  0xfa   : > { %828 = vst [vmem:[%s1176_s12] sm:$0xff] %v827_v41   ;;  %845 = vst [vmem:[%s1176_s12 + $0x10] sm:$0xff] %v837_v43  }
  0xfb   : > { %v457_v50 = vadd.f32 %v456_v45, %v450_v40  ;;  %v478_v51 = vadd.f32 %v471_v46, %v470_v44 }
  0xfd   : > { %v479_v54 = vadd.f32 %v478_v51, %v472_v49  ;;  %v458_v55 = vadd.f32 %v457_v50, %v451_v47 }
  0xff   : > { %v459_v58 = vadd.f32 %v458_v55, %v452_v52  ;;  %v480_v59 = vadd.f32 %v479_v54, %v473_v53 }
 0x101   : > { %v460_v61 = vadd.f32 %v459_v58, %v453_v56  ;;  %v481_v63 = vadd.f32 %v480_v59, %v474_v57 }
 0x103   : > { %v461_v2 = vadd.f32 %v460_v61, %v454_v60  ;;  %v482_v3 = vadd.f32 %v481_v63, %v475_v62 }
 0x105   : > { %v462_v5 = vadd.f32 %v461_v2, %v455_v0  ;;  %v483_v6 = vadd.f32 %v482_v3, %v476_v1 }
 0x107   : > { %v463_v7 = vrot.slane %v462_v5, 4  ;;  %v484_v8 = vadd.f32 %v483_v6, %v477_v4 }
 0x109   : > { %v464_v9 = vadd.f32 %v463_v7, %v462_v5  ;;  %v485_v10 = vrot.slane %v484_v8, 4 }
 0x10b   : > { %v465_v11 = vrot.slane %v464_v9, 2  ;;  %v486_v12 = vadd.f32 %v485_v10, %v484_v8 }
 0x10d   : > { %v466_v13 = vadd.f32 %v465_v11, %v464_v9  ;;  %v487_v14 = vrot.slane %v486_v12, 2 }
 0x10f   : > { %v467_v15 = vrot.slane %v466_v13, 1  ;;  %v488_v16 = vadd.f32 %v487_v14, %v486_v12 }
 0x111   : > { %v468_v17 = vadd.f32 %v467_v15, %v466_v13  ;;  %v489_v18 = vrot.slane %v488_v16, 1  ;;  %502 = sbr.rel (!%p1132_p4) target bundleno = 322 (0x142), region = 32 }
 0x113   : > { %469 = vst [vmem:[%s202_s30] sm:$0x1] %v468_v17  ;;  %v490_v19 = vadd.f32 %v489_v18, %v488_v16 }
 0x115   : > { %491 = vst [vmem:[%s202_s30 + $0x1] sm:$0x1] %v490_v19 }
 0x116   : > { %s1260_s4 = smov (!%p505_p9, %s504_s4), 8 }
 0x117   : > { %s798_s9 = sshll.u32 %s1260_s4, 6 }
 0x118   : > { %p801_p10 = scmp.eq.s32.totalorder %s798_s9, 0 }
 0x119   : > { %s1200_s10 = sshrl.u32 (!%p801_p10), %s1260_s4, 3 }
 0x11a   : > { %513 = sbr.rel (%p801_p10) target bundleno = 322 (0x142), region = 36  ;;  %p802_p11 = scmp.le.s32.totalorder (!%p801_p10), %s1200_s10, 0 }
 0x11f   : > { %714 = sbr.rel (%p802_p11) target bundleno = 305 (0x131), region = 120  ;;  %s1253_s15 = smov (!%p802_p11), %s1194_s8 }
 0x120   : > { %s1254_s20 = smov (!%p802_p11), %s1176_s12  ;;  %s1209_s23 = smov (!%p802_p11), 0  }
 0x121   : > { %s1211_s11 = smov (!%p802_p11), 0  }
 0x124 LB: >> { %v530_v20 = vld [vmem:[%s1061_s20] sm:$0xf]  ;;  %v532_v21 = vld [vmem:[%s1061_s20 + $0x4] sm:$0xf]  ;;  %v534_v22 = vld [vmem:[%s1061_s20 + $0x8] sm:$0xf]  ;;  %s1069_s11 = sphi %s1211_s11, %s524_s11   ;;  %s1065_s23 = sphi %s1209_s23, %s1255_s23   ;;  %s1061_s20 = sphi %s1254_s20, %s551_s20   ;;  %s1057_s15 = sphi %s1253_s15, %s552_s15  }
 0x125   : >> { %531 = vst [vmem:[%s1057_s15] sm:$0xf] %v530_v20  ;;  %533 = vst [vmem:[%s1057_s15 + $0x4] sm:$0xf] %v532_v21  ;;  %v536_v23 = vld [vmem:[%s1061_s20 + $0xc] sm:$0xf]  ;;  %s546_s14 = sadd.s32 1, %s1065_s23 }
 0x126   : >> { %535 = vst [vmem:[%s1057_s15 + $0x8] sm:$0xf] %v534_v22  ;;  %v538_v24 = vld [vmem:[%s1061_s20 + $0x10] sm:$0xf]  ;;  %v540_v25 = vld [vmem:[%s1061_s20 + $0x14] sm:$0xf]  ;;  %p547_p12 = scmp.ge.s32.totalorder %s546_s14, %s1200_s10 }
 0x127   : >> { %537 = vst [vmem:[%s1057_s15 + $0xc] sm:$0xf] %v536_v23  ;;  %539 = vst [vmem:[%s1057_s15 + $0x10] sm:$0xf] %v538_v24  ;;  %v542_v26 = vld [vmem:[%s1061_s20 + $0x18] sm:$0xf] }
 0x128   : >> { %541 = vst [vmem:[%s1057_s15 + $0x14] sm:$0xf] %v540_v25  ;;  %v544_v27 = vld [vmem:[%s1061_s20 + $0x1c] sm:$0xf]  ;;  %543 = vst [vmem:[%s1057_s15 + $0x18] sm:$0xf] %v542_v26 }
 0x129   : >> { %545 = vst [vmem:[%s1057_s15 + $0x1c] sm:$0xf] %v544_v27  ;;  %s1262_s14 = smov (%p547_p12, %s546_s14), 0  ;;  %s524_s11 = sadd.s32 1, %s1069_s11  }
 0x12a   : >> { %s803_s17 = sshll.u32 %s1262_s14, 5  ;;  %p523_p13 = scmp.ge.s32.totalorder %s524_s11, %s1200_s10 }
 0x12b   : >> { %s551_s20 = scalar_lea.vmem %s1176_s12, %s803_s17 [#allocation2]   ;;  %s552_s15 = scalar_lea.vmem %s1194_s8, %s803_s17  }
 0x12c   : >> { %s1255_s23 = smov %s1262_s14  ;;  %526 = sbr.rel (!%p523_p13) target bundleno = 292 (0x124), region = 126 }
 0x131 PF: > { %s1230_s18 = sand.u32 7, %s1260_s4   ;;  %s822_s21 = sshll.u32 %s1200_s10, 5 }
 0x132   : > { %s557_s22 = scalar_lea.vmem %s1176_s12, %s822_s21 [#allocation2]   ;;  %s559_s24 = scalar_lea.vmem %s1194_s8, %s822_s21  }
 0x133   : > { %p808_p0 = scmp.le.s32.totalorder %s1230_s18, 0 }
 0x134   : > { %s1071_s25 = smov (!%p808_p0), %s559_s24   ;;  %s1075_s26 = smov (!%p808_p0), %s557_s22  }
 0x135   : > { %728 = sbr.rel (%p808_p0) target bundleno = 322 (0x142), region = 131  ;;  %s1079_s27 = smov (!%p808_p0), 0  }
 0x136   : > { %s1083_s28 = smov (!%p808_p0), 0  }
 0x13a LB: >> { %v569_v28 = vld [vmem:[%s1077_s26] sm:$0xf]  ;;  %s571_s29 = sadd.s32 1, %s1081_s27  ;;  %s563_s28 = sadd.s32 1, %s1085_s28   ;;  %s1085_s28 = sphi %s1083_s28, %s563_s28   ;;  %s1081_s27 = sphi %s1079_s27, %s1080_s27   ;;  %s1077_s26 = sphi %s1075_s26, %s576_s26   ;;  %s1073_s25 = sphi %s1071_s25, %s577_s25  }
 0x13b   : >> { %570 = vst [vmem:[%s1073_s25] sm:$0xf] %v569_v28  ;;  %p572_p1 = scmp.ge.s32.totalorder %s571_s29, %s1230_s18  ;;  %p562_p2 = scmp.ge.s32.totalorder %s563_s28, %s1230_s18 }
 0x13d   : >> { %s1264_s29 = smov (%p572_p1, %s571_s29), 0  ;;  %565 = sbr.rel (!%p562_p2) target bundleno = 314 (0x13a), region = 137 }
 0x13e   : >> { %s809_s12 = sshll.u32 %s1264_s29, 2  ;;  %s1080_s27 = smov %s1264_s29  }
 0x13f   : >> { %s576_s26 = scalar_lea.vmem %s557_s22, %s809_s12 [#allocation2]   ;;  %s577_s25 = scalar_lea.vmem %s559_s24, %s809_s12  }
 0x142 PF: > { %p11_p3 = scmp.ge.s32.totalorder %s1122_s16, 4   ;;  %s1256_s12 = smov %s1049_s13 }
 0x143   : > { %s1257_s13 = smov %s1130_s19  ;;  %s1258_s14 = smov %s1122_s16 }
 0x144   :  { %13 = sbr.rel (!%p11_p3) target bundleno = 2 (0x2), region = 148 }

</bundles_post_ra>
